<compile_context>
chip_gen: v5e
topology: v5e:2x2
jax: 0.10.0
libtpu: 0.0.40
codegen_flags: <defaults>
</compile_context>

<pallas_src>
import math
import functools

import jax
import jax.numpy as jnp
from jax.experimental import pallas as pl
from jax.experimental.pallas import tpu as pltpu


def _pick_tile(T, preferred=(256, 128, 64, 32, 16, 8)):
    """Largest MXU-friendly tile that divides T (falls back to T for tiny seqs)."""
    for t in preferred:
        if t <= T and T % t == 0:
            return t
    return T


def _flash_causal_kernel(xq_ref, xkv_ref, wq_ref, wkv_ref, o_ref,
                         q_sc, m_sc, l_sc, acc_sc, *, d_out, scale, tq, tk):
    # xq_ref:  (1, tq, d_in)   rows for the query tile
    # xkv_ref: (1, tk, d_in)   rows for the key/value tile
    # wq_ref:  (d_in, d_out)   pre-transposed W_query
    # wkv_ref: (d_in, 2*d_out) pre-transposed [W_key; W_value]
    # o_ref:   (1, tq, d_out)
    qi = pl.program_id(1)
    ki = pl.program_id(2)
    nk = pl.num_programs(2)

    @pl.when(ki == 0)
    def _init():
        # Project q once per q tile, pre-scaled by 1/sqrt(d_out); cache in scratch.
        xq = xq_ref[0]                                                  # (tq, d_in)
        q = jnp.dot(xq, wq_ref[...], preferred_element_type=jnp.float32)
        q_sc[...] = (q * scale).astype(q_sc.dtype)
        m_sc[...] = jnp.full_like(m_sc, -jnp.inf)
        l_sc[...] = jnp.zeros_like(l_sc)
        acc_sc[...] = jnp.zeros_like(acc_sc)

    # Skip kv tiles that lie entirely above the causal diagonal.
    @pl.when(ki * tk < (qi + 1) * tq)
    def _compute():
        xkv = xkv_ref[0]                                                # (tk, d_in)
        # Fused K/V projection: one MXU pass with N = 2*d_out.
        kv = jnp.dot(xkv, wkv_ref[...], preferred_element_type=jnp.float32)
        k = kv[:, :d_out].astype(xkv.dtype)                             # (tk, d_out)
        v = kv[:, d_out:].astype(xkv.dtype)                             # (tk, d_out)

        # scores = (q * scale) @ k^T  -- contract over the feature dim of both.
        s = jax.lax.dot_general(q_sc[...], k, (((1,), (1,)), ((), ())),
                                preferred_element_type=jnp.float32)     # (tq, tk)

        # Causal mask in global coordinates (only the diagonal block actually masks).
        row = qi * tq + jax.lax.broadcasted_iota(jnp.int32, (tq, tk), 0)
        col = ki * tk + jax.lax.broadcasted_iota(jnp.int32, (tq, tk), 1)
        s = jnp.where(col > row, -jnp.inf, s)

        # Online softmax update (all stats in f32).
        m_prev = m_sc[...]
        m_new = jnp.maximum(m_prev, s.max(axis=-1, keepdims=True))
        alpha = jnp.exp(m_prev - m_new)
        p = jnp.exp(s - m_new)
        l_sc[...] = alpha * l_sc[...] + p.sum(axis=-1, keepdims=True)
        acc_sc[...] = alpha * acc_sc[...] + jnp.dot(
            p.astype(v.dtype), v, preferred_element_type=jnp.float32)
        m_sc[...] = m_new

    # TODO(synk): nn.Dropout on attn_weights is identity in eval mode / p=0; training-mode
    # dropout with matching PyTorch RNG has no clean equivalent, so it is omitted.

    @pl.when(ki == nk - 1)
    def _finalize():
        inv_l = pl.reciprocal(l_sc[...], approx=True)
        o_ref[0] = (acc_sc[...] * inv_l).astype(o_ref.dtype)


def causal_attention(x, w_query, w_key, w_value):
    """x: (B, T, d_in); w_*: (d_out, d_in) (PyTorch nn.Linear layout). Returns (B, T, d_out)."""
    B, T, d_in = x.shape
    d_out = w_query.shape[0]
    tq = tk = _pick_tile(T)
    nq, nk = T // tq, T // tk
    scale = 1.0 / math.sqrt(d_out)

    # Wrapper-side (one-time) layout work: pre-transpose weights to (d_in, n) and fuse K/V.
    wq_t = jnp.transpose(w_query)                                         # (d_in, d_out)
    wkv_t = jnp.transpose(jnp.concatenate([w_key, w_value], axis=0))      # (d_in, 2*d_out)

    kernel = functools.partial(_flash_causal_kernel,
                               d_out=d_out, scale=scale, tq=tq, tk=tk)

    return pl.pallas_call(
        kernel,
        out_shape=jax.ShapeDtypeStruct((B, T, d_out), x.dtype),
        grid_spec=pltpu.PrefetchScalarGridSpec(
            num_scalar_prefetch=0,
            grid=(B, nq, nk),
            in_specs=[
                pl.BlockSpec((1, tq, d_in), lambda b, qi, ki: (b, qi, 0)),   # x (q rows)
                pl.BlockSpec((1, tk, d_in), lambda b, qi, ki: (b, ki, 0)),   # x (kv rows)
                pl.BlockSpec((d_in, d_out), lambda b, qi, ki: (0, 0)),       # W_query^T
                pl.BlockSpec((d_in, 2 * d_out), lambda b, qi, ki: (0, 0)),   # [W_key;W_value]^T
            ],
            out_specs=pl.BlockSpec((1, tq, d_out), lambda b, qi, ki: (b, qi, 0)),
            scratch_shapes=[
                pltpu.VMEM((tq, d_out), x.dtype),      # cached, pre-scaled q tile
                pltpu.VMEM((tq, 1), jnp.float32),      # running max m
                pltpu.VMEM((tq, 1), jnp.float32),      # running denom l
                pltpu.VMEM((tq, d_out), jnp.float32),  # output accumulator
            ],
        ),
        compiler_params=pltpu.CompilerParams(
            dimension_semantics=("parallel", "parallel", "arbitrary"),
        ),
    )(x, x, wq_t, wkv_t)


def reference(x, w_query, w_key, w_value):
    """Pure-JAX reference matching the PyTorch forward (eval mode, no dropout)."""
    q = jnp.einsum("btd,od->bto", x, w_query)
    k = jnp.einsum("btd,od->bto", x, w_key)
    v = jnp.einsum("btd,od->bto", x, w_value)
    d_out = w_key.shape[0]
    scores = jnp.einsum("bqo,bko->bqk", q, k) / math.sqrt(d_out)
    T = x.shape[1]
    mask = jnp.triu(jnp.ones((T, T), dtype=bool), k=1)
    scores = jnp.where(mask[None], -jnp.inf, scores)
    attn = jax.nn.softmax(scores, axis=-1)
    return jnp.einsum("bqk,bko->bqo", attn, v)


if __name__ == "__main__":
    # Small shapes consistent with the module: batch=2, seq=8, d_in=32, d_out=16.
    B, T, d_in, d_out = 2, 8, 32, 16

    key = jax.random.PRNGKey(0)
    kx, kq, kk, kv = jax.random.split(key, 4)

    x = jax.random.normal(kx, (B, T, d_in), dtype=jnp.float32)
    # Deterministic "nn.Linear" weights, shape (d_out, d_in), qkv_bias=False.
    w_query = jax.random.normal(kq, (d_out, d_in), dtype=jnp.float32) * (1.0 / math.sqrt(d_in))
    w_key = jax.random.normal(kk, (d_out, d_in), dtype=jnp.float32) * (1.0 / math.sqrt(d_in))
    w_value = jax.random.normal(kv, (d_out, d_in), dtype=jnp.float32) * (1.0 / math.sqrt(d_in))

    out = causal_attention(x, w_query, w_key, w_value)
    out = jax.block_until_ready(out)

    ref = reference(x, w_query, w_key, w_value)
    assert out.shape == (B, T, d_out), out.shape
    # Tolerance accounts for the EUP approximate reciprocal in the softmax finalize.
    assert jnp.allclose(out, ref, atol=2e-3, rtol=2e-3), float(jnp.max(jnp.abs(out - ref)))

    print("KERNEL_OK")
</pallas_src>

<mosaic_0001>
module attributes {stable_mosaic.version = 11 : i64} {
  func.func @_flash_causal_kernel(%arg0: i32, %arg1: i32, %arg2: i32, %arg3: memref<1x8x32xf32, #tpu.memory_space<vmem>>, %arg4: memref<1x8x32xf32, #tpu.memory_space<vmem>>, %arg5: memref<32x16xf32, #tpu.memory_space<vmem>>, %arg6: memref<32x32xf32, #tpu.memory_space<vmem>>, %arg7: memref<1x8x16xf32, #tpu.memory_space<vmem>>, %arg8: memref<8x16xf32, #tpu.memory_space<vmem>>, %arg9: memref<8x1xf32, #tpu.memory_space<vmem>>, %arg10: memref<8x1xf32, #tpu.memory_space<vmem>>, %arg11: memref<8x16xf32, #tpu.memory_space<vmem>>) attributes {dimension_semantics = [#tpu.dimension_semantics<parallel>, #tpu.dimension_semantics<parallel>, #tpu.dimension_semantics<arbitrary>], iteration_bounds = array<i64: 2, 1, 1>, scalar_prefetch = 0 : i64, scratch_operands = 4 : i64, tpu.core_type = #tpu.core_type<tc>, window_params = [{transform_indices = @transform_0, window_bounds = array<i64: 1, 8, 32>}, {transform_indices = @transform_1, window_bounds = array<i64: 1, 8, 32>}, {pipeline_mode = #tpu.pipeline_mode<synchronous>, transform_indices = @transform_2, window_bounds = array<i64: 32, 16>}, {pipeline_mode = #tpu.pipeline_mode<synchronous>, transform_indices = @transform_3, window_bounds = array<i64: 32, 32>}, {transform_indices = @transform_4, window_bounds = array<i64: 1, 8, 16>}]} {
    %c0_i32 = arith.constant 0 : i32
    %0 = arith.cmpi eq, %arg2, %c0_i32 : i32
    %1 = arith.extui %0 : i1 to i32
    %c0_i32_0 = arith.constant 0 : i32
    %2 = arith.cmpi ne, %1, %c0_i32_0 : i32
    scf.if %2 {
      %c0 = arith.constant 0 : index
      %c0_5 = arith.constant 0 : index
      %c0_6 = arith.constant 0 : index
      %12 = vector.load %arg3[%c0, %c0_5, %c0_6] : memref<1x8x32xf32, #tpu.memory_space<vmem>>, vector<1x8x32xf32>
      %13 = vector.shape_cast %12 : vector<1x8x32xf32> to vector<8x32xf32>
      %c0_7 = arith.constant 0 : index
      %c0_8 = arith.constant 0 : index
      %14 = vector.load %arg5[%c0_7, %c0_8] : memref<32x16xf32, #tpu.memory_space<vmem>>, vector<32x16xf32>
      %cst = arith.constant dense<0.000000e+00> : vector<8x16xf32>
      %15 = tpu.matmul %13, %14, %cst {dimension_numbers = #tpu.dot_dimension_numbers<[1], [0], [0], [1], [0, 0, 1, 1], [], []>} : vector<8x32xf32>, vector<32x16xf32>, vector<8x16xf32> -> vector<8x16xf32>
      %cst_9 = arith.constant 2.500000e-01 : f32
      %16 = vector.broadcast %cst_9 : f32 to vector<8x16xf32>
      %17 = arith.mulf %15, %16 : vector<8x16xf32>
      %c0_10 = arith.constant 0 : index
      %c0_11 = arith.constant 0 : index
      %18 = vector.load %arg8[%c0_10, %c0_11] : memref<8x16xf32, #tpu.memory_space<vmem>>, vector<8x16xf32>
      tpu.vector_store %arg8[%c0_10, %c0_11], %17 {strides = array<i32>} : memref<8x16xf32, #tpu.memory_space<vmem>>, vector<8x16xf32>,
      %cst_12 = arith.constant 0xFF800000 : f32
      %19 = vector.broadcast %cst_12 : f32 to vector<8x1xf32>
      %c0_13 = arith.constant 0 : index
      %c0_14 = arith.constant 0 : index
      %20 = vector.load %arg9[%c0_13, %c0_14] : memref<8x1xf32, #tpu.memory_space<vmem>>, vector<8x1xf32>
      tpu.vector_store %arg9[%c0_13, %c0_14], %19 {strides = array<i32>} : memref<8x1xf32, #tpu.memory_space<vmem>>, vector<8x1xf32>,
      %cst_15 = arith.constant 0.000000e+00 : f32
      %21 = vector.broadcast %cst_15 : f32 to vector<8x1xf32>
      %c0_16 = arith.constant 0 : index
      %c0_17 = arith.constant 0 : index
      %22 = vector.load %arg10[%c0_16, %c0_17] : memref<8x1xf32, #tpu.memory_space<vmem>>, vector<8x1xf32>
      tpu.vector_store %arg10[%c0_16, %c0_17], %21 {strides = array<i32>} : memref<8x1xf32, #tpu.memory_space<vmem>>, vector<8x1xf32>,
      %cst_18 = arith.constant 0.000000e+00 : f32
      %23 = vector.broadcast %cst_18 : f32 to vector<8x16xf32>
      %c0_19 = arith.constant 0 : index
      %c0_20 = arith.constant 0 : index
      %24 = vector.load %arg11[%c0_19, %c0_20] : memref<8x16xf32, #tpu.memory_space<vmem>>, vector<8x16xf32>
      tpu.vector_store %arg11[%c0_19, %c0_20], %23 {strides = array<i32>} : memref<8x16xf32, #tpu.memory_space<vmem>>, vector<8x16xf32>,
    } else {
    }
    %c8_i32 = arith.constant 8 : i32
    %3 = arith.muli %arg2, %c8_i32 : i32
    %c1_i32 = arith.constant 1 : i32
    %4 = arith.addi %arg1, %c1_i32 : i32
    %c8_i32_1 = arith.constant 8 : i32
    %5 = arith.muli %4, %c8_i32_1 : i32
    %6 = arith.cmpi slt, %3, %5 : i32
    %7 = arith.extui %6 : i1 to i32
    %c0_i32_2 = arith.constant 0 : i32
    %8 = arith.cmpi ne, %7, %c0_i32_2 : i32
    scf.if %8 {
      %c0 = arith.constant 0 : index
      %c0_5 = arith.constant 0 : index
      %c0_6 = arith.constant 0 : index
      %12 = vector.load %arg4[%c0, %c0_5, %c0_6] : memref<1x8x32xf32, #tpu.memory_space<vmem>>, vector<1x8x32xf32>
      %13 = vector.shape_cast %12 : vector<1x8x32xf32> to vector<8x32xf32>
      %c0_7 = arith.constant 0 : index
      %c0_8 = arith.constant 0 : index
      %14 = vector.load %arg6[%c0_7, %c0_8] : memref<32x32xf32, #tpu.memory_space<vmem>>, vector<32x32xf32>
      %cst = arith.constant dense<0.000000e+00> : vector<8x32xf32>
      %15 = tpu.matmul %13, %14, %cst {dimension_numbers = #tpu.dot_dimension_numbers<[1], [0], [0], [1], [0, 0, 1, 1], [], []>} : vector<8x32xf32>, vector<32x32xf32>, vector<8x32xf32> -> vector<8x32xf32>
      %16 = vector.extract_strided_slice %15 {offsets = [0, 0], sizes = [8, 16], strides = [1, 1]} : vector<8x32xf32> to vector<8x16xf32>
      %17 = vector.extract_strided_slice %15 {offsets = [0, 16], sizes = [8, 16], strides = [1, 1]} : vector<8x32xf32> to vector<8x16xf32>
      %c0_9 = arith.constant 0 : index
      %c0_10 = arith.constant 0 : index
      %18 = vector.load %arg8[%c0_9, %c0_10] : memref<8x16xf32, #tpu.memory_space<vmem>>, vector<8x16xf32>
      %cst_11 = arith.constant dense<0.000000e+00> : vector<8x8xf32>
      %19 = tpu.matmul %18, %16, %cst_11 {dimension_numbers = #tpu.dot_dimension_numbers<[1], [1], [0], [0], [0, 0, 1, 0], [], []>} : vector<8x16xf32>, vector<8x16xf32>, vector<8x8xf32> -> vector<8x8xf32>
      %c8_i32_12 = arith.constant 8 : i32
      %20 = arith.muli %arg1, %c8_i32_12 : i32
      %21 = tpu.iota {dimensions = array<i32: 0>} : vector<8x8xi32>
      %22 = vector.broadcast %20 : i32 to vector<8x8xi32>
      %23 = arith.addi %22, %21 : vector<8x8xi32>
      %c8_i32_13 = arith.constant 8 : i32
      %24 = arith.muli %arg2, %c8_i32_13 : i32
      %25 = tpu.iota {dimensions = array<i32: 1>} : vector<8x8xi32>
      %26 = vector.broadcast %24 : i32 to vector<8x8xi32>
      %27 = arith.addi %26, %25 : vector<8x8xi32>
      %28 = arith.cmpi sgt, %27, %23 : vector<8x8xi32>
      %cst_14 = arith.constant 0xFF800000 : f32
      %29 = vector.broadcast %cst_14 : f32 to vector<8x8xf32>
      %30 = arith.select %28, %29, %19 : vector<8x8xi1>, vector<8x8xf32>
      %c0_15 = arith.constant 0 : index
      %c0_16 = arith.constant 0 : index
      %31 = vector.load %arg9[%c0_15, %c0_16] : memref<8x1xf32, #tpu.memory_space<vmem>>, vector<8x1xf32>
      %cst_17 = arith.constant dense<0xFF800000> : vector<8xf32>
      %32 = vector.multi_reduction <maximumf>, %30, %cst_17 [1] : vector<8x8xf32> to vector<8xf32>
      %33 = vector.shape_cast %32 : vector<8xf32> to vector<8x1xf32>
      %34 = arith.maximumf %31, %33 : vector<8x1xf32>
      %35 = arith.subf %31, %34 : vector<8x1xf32>
      %36 = math.exp %35 : vector<8x1xf32>
      %37 = vector.broadcast %34 : vector<8x1xf32> to vector<8x8xf32>
      %38 = arith.subf %30, %37 : vector<8x8xf32>
      %39 = math.exp %38 : vector<8x8xf32>
      %c0_18 = arith.constant 0 : index
      %c0_19 = arith.constant 0 : index
      %40 = vector.load %arg10[%c0_18, %c0_19] : memref<8x1xf32, #tpu.memory_space<vmem>>, vector<8x1xf32>
      %41 = arith.mulf %36, %40 : vector<8x1xf32>
      %cst_20 = arith.constant dense<0.000000e+00> : vector<8xf32>
      %42 = vector.multi_reduction <add>, %39, %cst_20 [1] : vector<8x8xf32> to vector<8xf32>
      %43 = vector.shape_cast %42 : vector<8xf32> to vector<8x1xf32>
      %44 = arith.addf %41, %43 : vector<8x1xf32>
      %c0_21 = arith.constant 0 : index
      %c0_22 = arith.constant 0 : index
      %45 = vector.load %arg10[%c0_21, %c0_22] : memref<8x1xf32, #tpu.memory_space<vmem>>, vector<8x1xf32>
      tpu.vector_store %arg10[%c0_21, %c0_22], %44 {strides = array<i32>} : memref<8x1xf32, #tpu.memory_space<vmem>>, vector<8x1xf32>,
      %c0_23 = arith.constant 0 : index
      %c0_24 = arith.constant 0 : index
      %46 = vector.load %arg11[%c0_23, %c0_24] : memref<8x16xf32, #tpu.memory_space<vmem>>, vector<8x16xf32>
      %47 = vector.broadcast %36 : vector<8x1xf32> to vector<8x16xf32>
      %48 = arith.mulf %47, %46 : vector<8x16xf32>
      %cst_25 = arith.constant dense<0.000000e+00> : vector<8x16xf32>
      %49 = tpu.matmul %39, %17, %cst_25 {dimension_numbers = #tpu.dot_dimension_numbers<[1], [0], [0], [1], [0, 0, 1, 1], [], []>} : vector<8x8xf32>, vector<8x16xf32>, vector<8x16xf32> -> vector<8x16xf32>
      %50 = arith.addf %48, %49 : vector<8x16xf32>
      %c0_26 = arith.constant 0 : index
      %c0_27 = arith.constant 0 : index
      %51 = vector.load %arg11[%c0_26, %c0_27] : memref<8x16xf32, #tpu.memory_space<vmem>>, vector<8x16xf32>
      tpu.vector_store %arg11[%c0_26, %c0_27], %50 {strides = array<i32>} : memref<8x16xf32, #tpu.memory_space<vmem>>, vector<8x16xf32>,
      %c0_28 = arith.constant 0 : index
      %c0_29 = arith.constant 0 : index
      %52 = vector.load %arg9[%c0_28, %c0_29] : memref<8x1xf32, #tpu.memory_space<vmem>>, vector<8x1xf32>
      tpu.vector_store %arg9[%c0_28, %c0_29], %34 {strides = array<i32>} : memref<8x1xf32, #tpu.memory_space<vmem>>, vector<8x1xf32>,
    } else {
    }
    %c0_i32_3 = arith.constant 0 : i32
    %9 = arith.cmpi eq, %arg2, %c0_i32_3 : i32
    %10 = arith.extui %9 : i1 to i32
    %c0_i32_4 = arith.constant 0 : i32
    %11 = arith.cmpi ne, %10, %c0_i32_4 : i32
    scf.if %11 {
      %c0 = arith.constant 0 : index
      %c0_5 = arith.constant 0 : index
      %12 = vector.load %arg10[%c0, %c0_5] : memref<8x1xf32, #tpu.memory_space<vmem>>, vector<8x1xf32>
      %13 = tpu.reciprocal %12 {approx = true} : vector<8x1xf32> -> vector<8x1xf32>
      %c0_6 = arith.constant 0 : index
      %c0_7 = arith.constant 0 : index
      %14 = vector.load %arg11[%c0_6, %c0_7] : memref<8x16xf32, #tpu.memory_space<vmem>>, vector<8x16xf32>
      %15 = vector.broadcast %13 : vector<8x1xf32> to vector<8x16xf32>
      %16 = arith.mulf %14, %15 : vector<8x16xf32>
      %c0_8 = arith.constant 0 : index
      %c0_9 = arith.constant 0 : index
      %c0_10 = arith.constant 0 : index
      %17 = vector.load %arg7[%c0_8, %c0_9, %c0_10] : memref<1x8x16xf32, #tpu.memory_space<vmem>>, vector<1x8x16xf32>
      %18 = vector.shape_cast %17 : vector<1x8x16xf32> to vector<8x16xf32>
      %19 = vector.shape_cast %16 : vector<8x16xf32> to vector<1x8x16xf32>
      tpu.vector_store %arg7[%c0_8, %c0_9, %c0_10], %19 {strides = array<i32>} : memref<1x8x16xf32, #tpu.memory_space<vmem>>, vector<1x8x16xf32>,
    } else {
    }
    return
  }
  func.func @transform_0(%arg0: i32, %arg1: i32, %arg2: i32) -> (i32, i32, i32) {
    %c0_i32 = arith.constant 0 : i32
    %c0_i32_0 = arith.constant 0 : i32
    return %arg0, %arg1, %c0_i32 : i32, i32, i32
  }
  func.func @transform_1(%arg0: i32, %arg1: i32, %arg2: i32) -> (i32, i32, i32) {
    %c0_i32 = arith.constant 0 : i32
    %c0_i32_0 = arith.constant 0 : i32
    return %arg0, %arg2, %c0_i32 : i32, i32, i32
  }
  func.func @transform_2(%arg0: i32, %arg1: i32, %arg2: i32) -> (i32, i32) {
    %c0_i32 = arith.constant 0 : i32
    %c0_i32_0 = arith.constant 0 : i32
    %c0_i32_1 = arith.constant 0 : i32
    return %c0_i32, %c0_i32_0 : i32, i32
  }
  func.func @transform_3(%arg0: i32, %arg1: i32, %arg2: i32) -> (i32, i32) {
    %c0_i32 = arith.constant 0 : i32
    %c0_i32_0 = arith.constant 0 : i32
    %c0_i32_1 = arith.constant 0 : i32
    return %c0_i32, %c0_i32_0 : i32, i32
  }
  func.func @transform_4(%arg0: i32, %arg1: i32, %arg2: i32) -> (i32, i32, i32) {
    %c0_i32 = arith.constant 0 : i32
    %c0_i32_0 = arith.constant 0 : i32
    return %arg0, %arg1, %c0_i32 : i32, i32, i32
  }
}

</mosaic_0001>

<bundles_post_ra>
// kernel: tpu_custom_call.1
= control target key start
LH: loop header
LB: loop body
LE: loop exit
PB: predicated region body
PF: predicated region fallthrough
CT: control target
= control target key end

     0   :  { %9 = vsyncpa [#allocation7], 0  ;;  %s974_s0 = inlined_call_operand.vmem [shape: f32[2,8,32], index: 0, kind: input, shape index: {}]   ;;  %s975_s1 = inlined_call_operand.hbm [shape: f32[2,8,32], index: 1, kind: input, shape index: {}]   ;;  %s976_s2 = inlined_call_operand.vmem [shape: f32[32,16], index: 2, kind: input, shape index: {}]   ;;  %s977_s3 = inlined_call_operand.vmem [shape: f32[32,32], index: 3, kind: input, shape index: {}]   ;;  %s978_s4 = inlined_call_operand.hbm [shape: f32[2,8,16], index: 4, kind: output, shape index: {}]  }
   0x1   :  { %11 = vsyncpa [#allocation7 + $0x1], 0 }
   0x2   :  { %12 = vsyncpa [#allocation8], 0 }
   0x3   :  { %14 = vsyncpa [#allocation8 + $0x1], 0  ;;  %s808_s15 = smov 0   ;;  %s810_s16 = smov 0  }
   0x4   :  { %s812_s17 = smov 0   ;;  %s814_s18 = smov 0  }
   0x5   :  { %s816_s19 = smov 0   ;;  %s818_s20 = smov 0  }
   0x6 LB: > { %s572_s21 = sadd.s32 4294967295, %s777_s20   ;;  %s573_s22 = sadd.s32 4294967294, %s777_s20   ;;  %s777_s20 = sphi %s818_s20, %s20_s20   ;;  %s773_s19 = sphi %s816_s19, %s987_s19   ;;  %s769_s18 = sphi %s814_s18, %s986_s18   ;;  %s765_s17 = sphi %s812_s17, %s985_s17   ;;  %s761_s16 = sphi %s810_s16, %s984_s16   ;;  %s757_s15 = sphi %s808_s15, %s983_s15  }
   0x7   : > { %s39_s23 = sadd.s32 1, %s773_s19  ;;  %s76_s24 = sadd.s32 1, %s765_s17 }
   0x8   : > { %p41_p0 = scmp.ge.s32.totalorder %s39_s23, 2  ;;  %p83_p1 = scmp.ne.s32.totalorder %s765_s17, %s761_s16 }
   0x9   : > { %p84_p2 = scmp.eq.s32.totalorder %s777_s20, 0  ;;  %p89_p3 = scmp.ne.s32.totalorder %s761_s16, %s757_s15 }
   0xa   : > { %s989_s23 = smov (%p41_p0, %s39_s23), 0  ;;  %p90_p5 = scmp.eq.s32.totalorder %s572_s21, 0 }
   0xb   : > { %p849_p4 = por %p84_p2, %p83_p1  ;;  %s71_s26 = ssub.s32 %s773_s19, %s989_s23 }
   0xc   : > { %p157_p6 = scmp.eq.s32.totalorder %s572_s21, 1  ;;  %p74_p7 = scmp.eq.s32.totalorder %s71_s26, 0 }
   0xd   : > { %p855_p8 = por %p90_p5, %p89_p3  ;;  %p163_p10 = scmp.eq.s32.totalorder %s573_s22, 1 }
   0xe   : > { %p859_p9 = por %p157_p6, %p83_p1  ;;  %p575_p12 = scmp.ge.s32.totalorder %s777_s20, 2 }
   0xf   : > { %s864_s29 = scalar_select %p74_p7, %s765_s17, %s76_s24  }
  0x10   : > { %p866_p11 = por %p163_p10, %p89_p3  ;;  %p603_p13 = scmp.lt.s32.totalorder %s777_s20, 2 }
  0x11   : > { %s199_s5 = sand.u32 1, %s765_s17   ;;  %s577_s7 = sshll.u32 %s773_s19, 3 }
  0x12   : > { %s576_s6 = sshll.u32 %s199_s5, 3  ;;  %s208_s10 = scalar_lea.hbm %s975_s1, %s577_s7 }
  0x13   : > { %s203_s11 = scalar_lea.vmem [#allocation6], %s576_s6  ;;  %s210_s13 = sshll.u32 %s208_s10, 4  ;;  %s211_s13 = int_to_ptr.hbm [resolvable:$true] %s210_s13 }
  0x14   : > { %s212_s12 = sshll.u32 %s203_s11, 4  ;;  %p596_p0 = pnand %p603_p13, %p849_p4  ;;  %s213_s12 = int_to_ptr.vmem [resolvable:$true] %s212_s12 }
  0x15   : > { %p578_p1 = scmp.ge.s32.totalorder %s777_s20, 1  ;;  %p217_p2 = scmp.lt.s32.totalorder %s777_s20, 3 }
  0x16   : > { %s200_s14 = scalar_lea.sflag [#allocation7], %s199_s5 }
  0x17   : > { %598 = dma.hbm_to_vmem [thread:$0]  (!%p596_p0), %s211_s13, 128, %s213_s12, %s200_s14  }
  0x18   : > { %p218_p3 = pnand %p578_p1, %p217_p2 }
  0x19   : > { %s882_s21 = sand.u32 (!%p218_p3), 1, %s761_s16  }
  0x1a   : > { %221 = sbr.rel (%p218_p3) target bundleno = 784 (0x310), region = 36  ;;  %s579_s22 = sshll.u32 (!%p218_p3), %s882_s21, 3 }
  0x1b   : > { %s224_s24 = scalar_lea.sflag (!%p218_p3), [#allocation7], %s882_s21  ;;  %s227_s26 = scalar_lea.vmem (!%p218_p3), [#allocation6], %s579_s22 }
  0x1f   : > { %748 = dma.done.wait (%p855_p8), %s224_s24, 128  }
  0x20   : > { %750 = vsyncadd (%p855_p8), %s224_s24, 4294967168  ;;  %p260_p4 = scmp.lt.s32.totalorder %s769_s18, 1  ;;  %v275_v0 = vld [vmem:[%s976_s2 + $0x18] sm:$0xff]  ;;  %v274_v1 = vld [vmem:[%s976_s2 + $0x10] sm:$0xff]  ;;  %vm276_vm0 = vcmask 261120   ;;  %vm301_vm1 = vcmask 130048   ;;  %v372_v17 = vlaneseq }
  0x21   : > { %292 = vmatpush.msra.mxu0 %v275_v0  ;;  %v318_v2 = vld [vmem:[%s977_s3 + $0x18] sm:$0xff]  ;;  %v273_v3 = vld [vmem:[%s976_s2 + $0x8] sm:$0xff]  ;;  %v317_v4 = vld [vmem:[%s977_s3 + $0x10] sm:$0xff]  ;;  %v779_v10 = vmov 0.0   ;;  %s780_s27 = smov 112   ;;  %vm303_vm2 = vcmask 7168  }
  0x22   : > { %s261_s25 = scalar_select %p260_p4, %s769_s18, 1  ;;  %335 = vmatpush.msra.mxu1 %v318_v2  ;;  %v316_v5 = vld [vmem:[%s977_s3 + $0x8] sm:$0xff]  ;;  %v272_v6 = vld [vmem:[%s976_s2] sm:$0xff]  ;;  %306 = vst.msk [vmem:[#allocation5] sm:$0xff] %vm301_vm1, %v779_v10  ;;  %v781_v15 = vmov -inf   ;;  %v373_v18 = vshrl.u32 %v372_v17, 7 }
  0x23   : > { %293 = vmatpush.msra.mxu0 %v274_v1  ;;  %v315_v8 = vld [vmem:[%s977_s3] sm:$0xff]  ;;  %304 = vst.msk [vmem:[#allocation3] sm:$0xff] %vm303_vm2, %v781_v15  ;;  %v377_v19 = vand.u32 127, %v372_v17  ;;  %vm383_vm4 = vcmask 64512   ;;  %v782_v23 = vmov 0   ;;  %s458_s7 = scalar_lea.sflag [#allocation8], %s882_s21 }
  0x24   : > { %s581_s5 = sshll.u32 %s261_s25, 3  ;;  %336 = vmatpush.msra.mxu1 %v317_v4  ;;  %v314_v9 = vld [vmem:[%s227_s26] sm:$0xff]  ;;  %305 = vst.msk [vmem:[#allocation4] sm:$0xff] %vm303_vm2, %v779_v10  ;;  %657 = vset.pattern.permute.xlu0 %v782_v23  ;;  %s588_s26 = sshll.u32 %s769_s18, 3 }
  0x25   : > { %s266_s24 = scalar_lea.vmem %s974_s0, %s581_s5  ;;  %294 = vmatpush.msra.mxu0 %v273_v3  ;;  %vm380_vm3 = vcmp.gt.s32.totalorder %v377_v19, %v373_v18  ;;  %658 = vset.pattern.permute.xlu2 %v782_v23  ;;  %s469_s14 = scalar_lea.hbm %s978_s4, %s588_s26 }
  0x26   : > { %v271_v7 = vld [vmem:[%s266_s24] sm:$0xff]  ;;  %337 = vmatpush.msra.mxu1 %v316_v5  ;;  %s259_s24 = scalar_lea.vmem [#allocation9], %s579_s22  ;;  %s473_s6 = sshll.u32 %s469_s14, 4  ;;  %s474_s6 = int_to_ptr.hbm [resolvable:$true] %s473_s6 }
  0x27   : > { %295 = vmatpush.msra.mxu0 %v272_v6  ;;  %s471_s25 = sshll.u32 %s259_s24, 4  ;;  %s709_s8 = sshra.s32 %s474_s6, 4  ;;  %s472_s25 = int_to_ptr.vmem [resolvable:$true] %s471_s25  ;;  %s710_s8 = int_to_ptr.hbm [resolvable:$true] %s709_s8 }
  0x28   : > { %582 = vmatmul.msk.f32.vlgmr.msra.gmra.mxu0 %vm276_vm0, %v271_v7  ;;  %338 = vmatpush.msra.mxu1 %v315_v8  ;;  %s711_s18 = scalar_lea.hbm %s710_s8, 8  ;;  %s715_s22 = scalar_lea.hbm %s978_s4, 16 }
  0x29   : > { %583 = vmatmul.msk.f32.vlgmr.msra.gmra.mxu1 %vm276_vm0, %v314_v9  ;;  %v407_v40 = vld [vmem:[#allocation5] sm:$0xff]  ;;  %p712_p5 = scmp.ne.s32.totalorder %s710_s8, %s711_s18  ;;  %p716_p8 = scmp.lt.s32.totalorder %s710_s8, %s978_s4 }
  0x2a   : > { %v382_v24 = vld [vmem:[#allocation3] sm:$0xff]  ;;  %p717_p10 = scmp.lt.s32.totalorder %s715_s22, %s711_s18 }
  0x2b   : > { %v399_v35 = vld [vmem:[#allocation4] sm:$0xff]  ;;  %p713_p6 = pnand %p712_p5, %p859_p9 }
  0x2c   : > { %p718_p13 = por %p717_p10, %p716_p8 }
  0x2d   : > { %p714_p7 = pneg %p713_p6 }
  0x2f   : > { %p719_p0 = pnand %p718_p13, %p714_p7 }
  0xa5   : > { %v297_v11 = vpop.f32.mrf.mxu0 }
  0xa6   : > { %v300_v12 = vmul.f32 0.25, %v297_v11  ;;  %v340_v13 = vpop.f32.mrf.mxu1 }
  0xa7   : > { %414 = vrot.lane.b32.xlu1 %v340_v13, %s780_s27  ;;  %584 = vmatpush.xpose.msk.msra.mxu2 %vm301_vm1, %v340_v13 }
  0xa8   : > { %302 = vst.msk [vmem:[#allocation2] sm:$0xff] %vm301_vm1, %v300_v12 }
  0xaf   : > { %v343_v14 = vld [vmem:[#allocation2] sm:$0xff] }
  0xb0   : > { %585 = vmatmul.msk.f32.vlgmr.msra.gmra.mxu2 %vm301_vm1, %v343_v14 }
 0x119   : > { %v415_v16 = vpop.permute.xlu1 %414 }
 0x11a   : > { %435 = vmatpush.msra.mxu3 %v415_v16 }
 0x133   : > { %v368_v20 = vpop.f32.mrf.mxu2 }
 0x134   : > { %v381_v21 = vsel %vm380_vm3, -inf, %v368_v20 }
 0x135   : > { %v384_v22 = vsel %vm383_vm4, %v381_v21, -inf }
 0x136   : > { %385 = vmax.xlane.f32.xlu0 %v384_v22 }
 0x1a9   : > { %v386_v25 = vpop.xlane.xlu0 %385 }
 0x1aa   : > { %v387_v26 = vmax.f32 %v382_v24, %v386_v25 }
 0x1ac   : > { %v388_v27 = vsub.f32 %v382_v24, %v387_v26  ;;  %442 = vst.msk [vmem:[#allocation3] sm:$0xff] %vm303_vm2, %v387_v26  ;;  %393 = vperm.xlu0 %657, %v387_v26  }
 0x1ae   : > { %v389_v28 = vmul.f32 1.442695, %v388_v27 }
 0x1b0   : > { %659 = vpow2.f32 %v389_v28 }
 0x1b6   : > { %v660_v29 = vpop.eup %659 }
 0x1b7   : > { %410 = vperm.xlu2 %658, %v660_v29   ;;  %v400_v36 = vmul.f32 %v660_v29, %v399_v35 }
 0x211   : > { %v411_v41 = vpop.permute.xlu2 %410 }
 0x212   : > { %v413_v42 = vmul.f32 %v411_v41, %v407_v40 }
 0x21e   : > { %v394_v30 = vpop.permute.xlu0 %393 }
 0x21f   : > { %v396_v31 = vsub.f32 %v381_v21, %v394_v30 }
 0x221   : > { %v397_v32 = vmul.f32 1.442695, %v396_v31 }
 0x223   : > { %661 = vpow2.f32 %v397_v32 }
 0x229   : > { %v662_v33 = vpop.eup %661 }
 0x22a   : > { %586 = vmatmul.msk.f32.vlgmr.msra.gmra.mxu3 %vm383_vm4, %v662_v33  ;;  %v401_v34 = vsel %vm383_vm4, %v662_v33, 0.0 }
 0x22b   : > { %402 = vadd.xlane.f32.xlu1 %v401_v34 }
 0x29e   : > { %v403_v37 = vpop.xlane.xlu1 %402 }
 0x29f   : > { %v404_v38 = vadd.f32 %v403_v37, %v400_v36 }
 0x2a1   : > { %406 = vst.msk [vmem:[#allocation4] sm:$0xff] %vm303_vm2, %v404_v38 }
 0x2a8   : > { %v446_v39 = vld [vmem:[#allocation4] sm:$0xff] }
 0x2a9   : > { %663 = vrcp.f32 %v446_v39 }
 0x2ad   : > { %v437_v43 = vpop.f32.mrf.mxu3 }
 0x2ae   : > { %v440_v44 = vadd.f32 %v437_v43, %v413_v42 }
 0x2af   : > { %v664_v45 = vpop.eup %663 }
 0x2b0   : > { %441 = vst.msk [vmem:[#allocation5] sm:$0xff] %vm301_vm1, %v440_v44  ;;  %451 = vperm.xlu2 %658, %v664_v45  }
 0x2b7   : > { %v448_v46 = vld [vmem:[#allocation5] sm:$0xff] }
 0x30a   : > { %v452_v47 = vpop.permute.xlu2 %451 }
 0x30b   : > { %v454_v48 = vmul.f32 %v452_v47, %v448_v46 }
 0x30d   : > { %456 = vst.msk [vmem:[%s259_s24] sm:$0xff] %vm301_vm1, %v454_v48 }
 0x30e   : > { %722 = shalt.err (!%p719_p0)
}
 0x30f   : > { %593 = dma.vmem_to_hbm [thread:$0]  (%p859_p9), %s472_s25, 128, %s474_s6, %s458_s7  }
 0x310 PF: > { %s485_s21 = sand.u32 1, %s757_s15   ;;  %p600_p1 = pnand %p575_p12, %p866_p11 }
 0x311   : > { %s486_s27 = scalar_lea.sflag [#allocation8], %s485_s21 }
 0x312   : > { %p601_p2 = pneg %p600_p1 }
 0x314   : > { %752 = dma.done.wait (%p601_p2), %s486_s27, 128  }
 0x315   : > { %754 = vsyncadd (%p601_p2), %s486_s27, 4294967168  ;;  %s20_s20 = sadd.s32 1, %s777_s20   ;;  %s983_s15 = smov %s761_s16 }
 0x316   : > { %p17_p3 = scmp.ge.s32.totalorder %s20_s20, 4   ;;  %s984_s16 = smov %s765_s17 }
 0x317   : > { %s985_s17 = smov %s864_s29  ;;  %s986_s18 = smov %s773_s19 }
 0x318   : > { %s987_s19 = smov %s989_s23  ;;  %19 = sbr.rel (!%p17_p3) target bundleno = 6 (0x6), region = 96 }
 0x31d   :  { %492 = vsyncpa [#allocation7], 1 }
 0x31e   :  { %494 = vsyncpa [#allocation7 + $0x1], 1 }
 0x31f   :  { %495 = vsyncpa [#allocation8], 1 }
 0x320   :  { %497 = vsyncpa [#allocation8 + $0x1], 1 }

</bundles_post_ra>
